<compile_context>
chip_gen: v7x
topology: tpu7x:2x2x1
jax: 0.10.0
libtpu: 0.0.40
codegen_flags: <defaults>
</compile_context>

<pallas_src>
import jax
import jax.numpy as jnp
from jax.experimental import pallas as pl
from jax.experimental.pallas import tpu as pltpu

# --- problem sizes (small, consistent with the module) ----------------------
B = 2            # batch
C_IN = 8         # in_channels
C_OUT = 16       # out_channels
COND_DIM = 32    # cond_dim
T = 16           # sequence length
K = 3            # kernel_size
N_GROUPS = 8
EPS = 1e-5       # torch.nn.GroupNorm default
R = B * T        # rows of the flattened (batch*time, channel) slab

# --- row offsets inside the packed 16-lane weight slab (all multiples of 8) --
_W1_OFF, _W1_ROWS = 0, K * C_IN          # fused conv1 weight   (24, 16)
_WC_OFF, _WC_ROWS = 24, COND_DIM         # cond Linear weight   (32, 16)
_W2_OFF, _W2_ROWS = 56, K * C_OUT        # fused conv2 weight   (48, 16)
_WR_OFF, _WR_ROWS = 104, C_IN            # residual 1x1 weight  (8, 16)
_PG_OFF, _PG_ROWS = 112, C_OUT           # group-mean matrix    (16, 16)
_VE_OFF, _VE_ROWS = 128, 8               # 8 bias/affine rows   (8, 16)
MATS16_ROWS = _VE_OFF + _VE_ROWS         # 136

# --- row offsets inside the packed 32-lane operator slab ---------------------
_DP_OFF = 0          # D_prev (R, R): gathers h[t-1], zero at t==0, no cross-batch leak
_DN_OFF = R          # D_next (R, R): gathers h[t+1], zero at t==T-1
_BA_OFF = 2 * R      # Bavg   (R, R): per-sequence time average (1/T within batch block)
MATS32_ROWS = 3 * R  # 96

# Approximate EUP reciprocal in Mish.  Set False for bit-tighter agreement with
# the reference (then a 1e-3 tolerance holds).
_APPROX_RECIP = True


# --- in-kernel math helpers ---------------------------------------------------
def _mish(x):
    # mish(x) = x * tanh(softplus(x)).  With u = exp(x):
    #   tanh(softplus(x)) = u(u+2) / (u(u+2) + 2)
    # -> a single EUP transcendental (exp) instead of exp/log1p/tanh.
    u = jnp.exp(jnp.minimum(x, 20.0))
    num = u * (u + 2.0)
    if _APPROX_RECIP:
        t = num * pl.reciprocal(num + 2.0, approx=True)
    else:
        t = num / (num + 2.0)
    # for x > 20, tanh(softplus(x)) == 1 to fp32 precision
    return x * jnp.where(x > 20.0, 1.0, t)


# --- the Pallas kernel: whole batch in one invocation -------------------------
def resblock_kernel(x_ref, cond_ref, m16_ref, m32_ref, out_ref):
    f32 = jnp.float32
    x = x_ref[...]                                          # (R, C_IN)

    # packed weights: static, sublane-aligned ref views
    w1   = m16_ref[_W1_OFF:_W1_OFF + _W1_ROWS, :]           # (3*C_IN, C_OUT)
    wc   = m16_ref[_WC_OFF:_WC_OFF + _WC_ROWS, :]           # (COND_DIM, C_OUT)
    w2   = m16_ref[_W2_OFF:_W2_OFF + _W2_ROWS, :]           # (3*C_OUT, C_OUT)
    wres = m16_ref[_WR_OFF:_WR_OFF + _WR_ROWS, :]           # (C_IN, C_OUT)
    pavg = m16_ref[_PG_OFF:_PG_OFF + _PG_ROWS, :]           # (C_OUT, C_OUT)
    vecs = m16_ref[_VE_OFF:_VE_OFF + _VE_ROWS, :]           # (8, C_OUT)
    b1, g1w, g1b, bc, b2, g2w, g2b, bres = [vecs[i:i + 1, :] for i in range(8)]

    dpair = m32_ref[_DP_OFF:_DP_OFF + 2 * R, :]             # (2R, R) = [D_prev; D_next]
    bavg  = m32_ref[_BA_OFF:_BA_OFF + R, :]                 # (R, R)

    def dot(a, b):
        return jnp.dot(a, b, preferred_element_type=f32)

    def conv_k3(h, w, b):
        # "same" conv over each length-T sequence with all taps in ONE fused matmul.
        # Both shifted copies come from a single matmul against the stacked gather
        # matrix (zero-padded edges / no cross-batch leak are baked into D_pair).
        shifted = dot(dpair, h)                              # (2R, C)
        slab = jnp.concatenate(
            [shifted[0:R, :], h, shifted[R:2 * R, :]], axis=1)   # (R, 3*C)
        return dot(slab, w) + b                              # (R, C_OUT)

    def group_norm(h, gw, gb):
        # per-(batch, group) statistics purely with 2-D matmuls:
        # Bavg averages over time inside each batch block; P_avg averages over
        # each group's channels and broadcasts back to channel resolution.
        mean = dot(dot(bavg, h), pavg)                       # (R, C_OUT)
        ex2  = dot(dot(bavg, h * h), pavg)                   # (R, C_OUT)
        inv = jax.lax.rsqrt(ex2 - mean * mean + EPS)         # biased var (matches torch)
        return (h - mean) * inv * gw + gb

    # conv1 block: Conv1d -> GroupNorm -> Mish
    h = _mish(group_norm(conv_k3(x, w1, b1), g1w, g1b))

    # cond encoder: Mish -> Linear; additive FiLM (use_film_scale_modulation=False)
    ce = dot(_mish(cond_ref[...]), wc) + bc                  # (B, C_OUT)
    row = jax.lax.broadcasted_iota(jnp.int32, (R, 1), 0)     # flattened row index
    ce_rows = jnp.broadcast_to(ce[0:1, :], (R, C_OUT))
    for b in range(1, B):                                    # static unroll over batch
        ce_rows = jnp.where(row >= b * T, ce[b:b + 1, :], ce_rows)
    h = h + ce_rows

    # conv2 block: Conv1d -> GroupNorm -> Mish
    h = _mish(group_norm(conv_k3(h, w2, b2), g2w, g2b))

    # residual 1x1 conv (in_channels != out_channels)
    out_ref[...] = (h + dot(x, wres) + bres).astype(out_ref.dtype)


# --- wrappers ------------------------------------------------------------------
@jax.jit
def diffusion_cond_res_block(x_btc, cond, mats16, mats32):
    """Channels-last forward: x (B, T, C_in), cond (B, cond_dim) -> (B, T, C_out)."""
    x2d = x_btc.astype(jnp.float32).reshape(R, C_IN)         # free reshape (contiguous)
    out2d = pl.pallas_call(
        resblock_kernel,
        out_shape=jax.ShapeDtypeStruct((R, C_OUT), jnp.float32),
        grid=(1,),                                           # single invocation: whole batch
        in_specs=[
            pl.BlockSpec((R, C_IN), lambda i: (0, 0)),
            pl.BlockSpec((B, COND_DIM), lambda i: (0, 0)),
            pl.BlockSpec((MATS16_ROWS, C_OUT), lambda i: (0, 0)),
            pl.BlockSpec((MATS32_ROWS, R), lambda i: (0, 0)),
        ],
        out_specs=pl.BlockSpec((R, C_OUT), lambda i: (0, 0)),
        compiler_params=pltpu.CompilerParams(
            dimension_semantics=("arbitrary",)),
    )(x2d, cond.astype(jnp.float32), mats16, mats32)
    return out2d.reshape(B, T, C_OUT)


def diffusion_cond_res_block_bct(x_bct, cond, mats16, mats32):
    """Compatibility wrapper matching the PyTorch (B, C_in, T) layout."""
    out = diffusion_cond_res_block(jnp.transpose(x_bct, (0, 2, 1)), cond, mats16, mats32)
    return jnp.transpose(out, (0, 2, 1))


# --- parameter construction & packing -------------------------------------------
def make_params(key):
    ks = jax.random.split(key, 12)

    def u(k, shape, fan_in):
        bound = 1.0 / (fan_in ** 0.5)
        return jax.random.uniform(k, shape, jnp.float32, -bound, bound)

    return {
        # conv weights stored as (K, C_in, C_out); biases / affine params as (1, C)
        'w1': u(ks[0], (K, C_IN, C_OUT), C_IN * K),
        'b1': u(ks[1], (1, C_OUT), C_IN * K),
        'g1w': 1.0 + 0.1 * jax.random.normal(ks[2], (1, C_OUT), jnp.float32),
        'g1b': 0.1 * jax.random.normal(ks[3], (1, C_OUT), jnp.float32),
        'wc': u(ks[4], (COND_DIM, C_OUT), COND_DIM),
        'bc': u(ks[5], (1, C_OUT), COND_DIM),
        'w2': u(ks[6], (K, C_OUT, C_OUT), C_OUT * K),
        'b2': u(ks[7], (1, C_OUT), C_OUT * K),
        'g2w': 1.0 + 0.1 * jax.random.normal(ks[8], (1, C_OUT), jnp.float32),
        'g2b': 0.1 * jax.random.normal(ks[9], (1, C_OUT), jnp.float32),
        'wres': u(ks[10], (C_IN, C_OUT), C_IN),
        'bres': u(ks[11], (1, C_OUT), C_IN),
    }


def pack_params(p):
    """Pack all weights + constant operator matrices into two lane-aligned slabs."""
    w1f = p['w1'].reshape(K * C_IN, C_OUT)          # fused conv taps: row = k*C_in + ci
    w2f = p['w2'].reshape(K * C_OUT, C_OUT)

    cg = C_OUT // N_GROUPS
    group_ids = jnp.arange(C_OUT) // cg
    gmask = (group_ids[:, None] == jnp.arange(N_GROUPS)[None, :]).astype(jnp.float32)
    p_avg = (gmask @ gmask.T) / cg                  # channel -> its-group mean (over channels)

    vecs = jnp.concatenate([p['b1'], p['g1w'], p['g1b'], p['bc'],
                            p['b2'], p['g2w'], p['g2b'], p['bres']], axis=0)   # (8, C_OUT)
    mats16 = jnp.concatenate([w1f, p['wc'], w2f, p['wres'], p_avg, vecs], axis=0)
    assert mats16.shape == (MATS16_ROWS, C_OUT)

    seq = jnp.arange(R)
    same_batch = (seq[:, None] // T) == (seq[None, :] // T)
    d_prev = ((seq[None, :] == seq[:, None] - 1) & same_batch).astype(jnp.float32)
    d_next = ((seq[None, :] == seq[:, None] + 1) & same_batch).astype(jnp.float32)
    bavg = same_batch.astype(jnp.float32) / T       # per-sequence time average
    mats32 = jnp.concatenate([d_prev, d_next, bavg], axis=0)
    assert mats32.shape == (MATS32_ROWS, R)
    return mats16, mats32


# --- pure-JAX reference (channels-last), faithful to the PyTorch module ----------
def ref_forward(x_btc, cond, p):
    x = x_btc.astype(jnp.float32)                   # (B, T, C_in)

    def conv(h, w, b):
        pad = K // 2
        hp = jnp.pad(h, ((0, 0), (pad, pad), (0, 0)))
        t = h.shape[1]
        out = jnp.broadcast_to(b[None], (h.shape[0], t, w.shape[2]))
        for k in range(K):
            out = out + jnp.einsum('btc,cd->btd', hp[:, k:k + t], w[k])
        return out

    def gn(h, gw, gb):
        bsz, t, c = h.shape
        cg = c // N_GROUPS
        hg = h.reshape(bsz, t, N_GROUPS, cg)
        mean = hg.mean(axis=(1, 3), keepdims=True)
        var = ((hg - mean) ** 2).mean(axis=(1, 3), keepdims=True)
        hn = ((hg - mean) / jnp.sqrt(var + EPS)).reshape(bsz, t, c)
        return hn * gw + gb

    def mish(v):
        return v * jnp.tanh(jax.nn.softplus(v))

    h = mish(gn(conv(x, p['w1'], p['b1']), p['g1w'], p['g1b']))
    ce = mish(cond.astype(jnp.float32)) @ p['wc'] + p['bc']         # (B, C_out)
    h = h + ce[:, None, :]
    h = mish(gn(conv(h, p['w2'], p['b2']), p['g2w'], p['g2b']))
    res = jnp.einsum('btc,cd->btd', x, p['wres']) + p['bres']
    return h + res                                                  # (B, T, C_out)


if __name__ == "__main__":
    key = jax.random.PRNGKey(0)
    k_x, k_c, k_p = jax.random.split(key, 3)

    x = jax.random.normal(k_x, (B, T, C_IN), jnp.float32)       # channels-last input
    cond = jax.random.normal(k_c, (B, COND_DIM), jnp.float32)
    params = make_params(k_p)
    mats16, mats32 = pack_params(params)

    out = jax.block_until_ready(diffusion_cond_res_block(x, cond, mats16, mats32))
    ref = jax.block_until_ready(ref_forward(x, cond, params))

    assert out.shape == (B, T, C_OUT), out.shape
    # tolerance absorbs the approximate EUP reciprocal in Mish; real semantic bugs
    # (wrong tap, group, or boundary handling) produce errors orders of magnitude larger.
    tol = 1e-2 if _APPROX_RECIP else 1e-3
    max_err = float(jnp.max(jnp.abs(out - ref)))
    assert jnp.allclose(out, ref, rtol=tol, atol=tol), max_err

    # also exercise the PyTorch-layout (B, C, T) compatibility wrapper
    out_bct = jax.block_until_ready(
        diffusion_cond_res_block_bct(jnp.transpose(x, (0, 2, 1)), cond, mats16, mats32))
    assert jnp.allclose(jnp.transpose(out_bct, (0, 2, 1)), out)

    print("KERNEL_OK")
</pallas_src>

<mosaic_0001>
module attributes {stable_mosaic.version = 11 : i64} {
  func.func @resblock_kernel(%arg0: i32, %arg1: memref<32x8xf32, #tpu.memory_space<vmem>>, %arg2: memref<2x32xf32, #tpu.memory_space<vmem>>, %arg3: memref<136x16xf32, #tpu.memory_space<vmem>>, %arg4: memref<96x32xf32, #tpu.memory_space<vmem>>, %arg5: memref<32x16xf32, #tpu.memory_space<vmem>>) attributes {dimension_semantics = [#tpu.dimension_semantics<arbitrary>], iteration_bounds = array<i64: 1>, scalar_prefetch = 0 : i64, scratch_operands = 0 : i64, tpu.core_type = #tpu.core_type<tc>, window_params = [{pipeline_mode = #tpu.pipeline_mode<synchronous>, transform_indices = @transform_0, window_bounds = array<i64: 32, 8>}, {pipeline_mode = #tpu.pipeline_mode<synchronous>, transform_indices = @transform_1, window_bounds = array<i64: 2, 32>}, {pipeline_mode = #tpu.pipeline_mode<synchronous>, transform_indices = @transform_2, window_bounds = array<i64: 136, 16>}, {pipeline_mode = #tpu.pipeline_mode<synchronous>, transform_indices = @transform_3, window_bounds = array<i64: 96, 32>}, {pipeline_mode = #tpu.pipeline_mode<synchronous>, transform_indices = @transform_4, window_bounds = array<i64: 32, 16>}]} {
    %c0 = arith.constant 0 : index
    %c0_0 = arith.constant 0 : index
    %0 = vector.load %arg1[%c0, %c0_0] : memref<32x8xf32, #tpu.memory_space<vmem>>, vector<32x8xf32>
    %c0_1 = arith.constant 0 : index
    %c0_2 = arith.constant 0 : index
    %1 = vector.load %arg3[%c0_1, %c0_2] : memref<136x16xf32, #tpu.memory_space<vmem>>, vector<24x16xf32>
    %c24 = arith.constant 24 : index
    %c0_3 = arith.constant 0 : index
    %2 = vector.load %arg3[%c24, %c0_3] : memref<136x16xf32, #tpu.memory_space<vmem>>, vector<32x16xf32>
    %c56 = arith.constant 56 : index
    %c0_4 = arith.constant 0 : index
    %3 = vector.load %arg3[%c56, %c0_4] : memref<136x16xf32, #tpu.memory_space<vmem>>, vector<48x16xf32>
    %c104 = arith.constant 104 : index
    %c0_5 = arith.constant 0 : index
    %4 = vector.load %arg3[%c104, %c0_5] : memref<136x16xf32, #tpu.memory_space<vmem>>, vector<8x16xf32>
    %c112 = arith.constant 112 : index
    %c0_6 = arith.constant 0 : index
    %5 = vector.load %arg3[%c112, %c0_6] : memref<136x16xf32, #tpu.memory_space<vmem>>, vector<16x16xf32>
    %c128 = arith.constant 128 : index
    %c0_7 = arith.constant 0 : index
    %6 = vector.load %arg3[%c128, %c0_7] : memref<136x16xf32, #tpu.memory_space<vmem>>, vector<8x16xf32>
    %7 = vector.extract_strided_slice %6 {offsets = [0, 0], sizes = [1, 16], strides = [1, 1]} : vector<8x16xf32> to vector<1x16xf32>
    %8 = vector.extract_strided_slice %6 {offsets = [1, 0], sizes = [1, 16], strides = [1, 1]} : vector<8x16xf32> to vector<1x16xf32>
    %9 = vector.extract_strided_slice %6 {offsets = [2, 0], sizes = [1, 16], strides = [1, 1]} : vector<8x16xf32> to vector<1x16xf32>
    %10 = vector.extract_strided_slice %6 {offsets = [3, 0], sizes = [1, 16], strides = [1, 1]} : vector<8x16xf32> to vector<1x16xf32>
    %11 = vector.extract_strided_slice %6 {offsets = [4, 0], sizes = [1, 16], strides = [1, 1]} : vector<8x16xf32> to vector<1x16xf32>
    %12 = vector.extract_strided_slice %6 {offsets = [5, 0], sizes = [1, 16], strides = [1, 1]} : vector<8x16xf32> to vector<1x16xf32>
    %13 = vector.extract_strided_slice %6 {offsets = [6, 0], sizes = [1, 16], strides = [1, 1]} : vector<8x16xf32> to vector<1x16xf32>
    %14 = vector.extract_strided_slice %6 {offsets = [7, 0], sizes = [1, 16], strides = [1, 1]} : vector<8x16xf32> to vector<1x16xf32>
    %c0_8 = arith.constant 0 : index
    %c0_9 = arith.constant 0 : index
    %15 = vector.load %arg4[%c0_8, %c0_9] : memref<96x32xf32, #tpu.memory_space<vmem>>, vector<64x32xf32>
    %c64 = arith.constant 64 : index
    %c0_10 = arith.constant 0 : index
    %16 = vector.load %arg4[%c64, %c0_10] : memref<96x32xf32, #tpu.memory_space<vmem>>, vector<32x32xf32>
    %cst = arith.constant dense<0.000000e+00> : vector<64x8xf32>
    %17 = tpu.matmul %15, %0, %cst {dimension_numbers = #tpu.dot_dimension_numbers<[1], [0], [0], [1], [0, 0, 1, 1], [], []>} : vector<64x32xf32>, vector<32x8xf32>, vector<64x8xf32> -> vector<64x8xf32>
    %18 = vector.extract_strided_slice %17 {offsets = [0, 0], sizes = [32, 8], strides = [1, 1]} : vector<64x8xf32> to vector<32x8xf32>
    %19 = vector.extract_strided_slice %17 {offsets = [32, 0], sizes = [32, 8], strides = [1, 1]} : vector<64x8xf32> to vector<32x8xf32>
    %20 = tpu.concatenate %18, %0, %19 in 1 : vector<32x8xf32>, vector<32x8xf32>, vector<32x8xf32> -> vector<32x24xf32>
    %cst_11 = arith.constant dense<0.000000e+00> : vector<32x16xf32>
    %21 = tpu.matmul %20, %1, %cst_11 {dimension_numbers = #tpu.dot_dimension_numbers<[1], [0], [0], [1], [0, 0, 1, 1], [], []>} : vector<32x24xf32>, vector<24x16xf32>, vector<32x16xf32> -> vector<32x16xf32>
    %22 = vector.broadcast %7 : vector<1x16xf32> to vector<32x16xf32>
    %23 = arith.addf %21, %22 : vector<32x16xf32>
    %cst_12 = arith.constant dense<0.000000e+00> : vector<32x16xf32>
    %24 = tpu.matmul %16, %23, %cst_12 {dimension_numbers = #tpu.dot_dimension_numbers<[1], [0], [0], [1], [0, 0, 1, 1], [], []>} : vector<32x32xf32>, vector<32x16xf32>, vector<32x16xf32> -> vector<32x16xf32>
    %cst_13 = arith.constant dense<0.000000e+00> : vector<32x16xf32>
    %25 = tpu.matmul %24, %5, %cst_13 {dimension_numbers = #tpu.dot_dimension_numbers<[1], [0], [0], [1], [0, 0, 1, 1], [], []>} : vector<32x16xf32>, vector<16x16xf32>, vector<32x16xf32> -> vector<32x16xf32>
    %26 = arith.mulf %23, %23 : vector<32x16xf32>
    %cst_14 = arith.constant dense<0.000000e+00> : vector<32x16xf32>
    %27 = tpu.matmul %16, %26, %cst_14 {dimension_numbers = #tpu.dot_dimension_numbers<[1], [0], [0], [1], [0, 0, 1, 1], [], []>} : vector<32x32xf32>, vector<32x16xf32>, vector<32x16xf32> -> vector<32x16xf32>
    %cst_15 = arith.constant dense<0.000000e+00> : vector<32x16xf32>
    %28 = tpu.matmul %27, %5, %cst_15 {dimension_numbers = #tpu.dot_dimension_numbers<[1], [0], [0], [1], [0, 0, 1, 1], [], []>} : vector<32x16xf32>, vector<16x16xf32>, vector<32x16xf32> -> vector<32x16xf32>
    %29 = arith.mulf %25, %25 : vector<32x16xf32>
    %30 = arith.subf %28, %29 : vector<32x16xf32>
    %cst_16 = arith.constant 9.99999974E-6 : f32
    %31 = vector.broadcast %cst_16 : f32 to vector<32x16xf32>
    %32 = arith.addf %30, %31 : vector<32x16xf32>
    %33 = math.rsqrt %32 : vector<32x16xf32>
    %34 = arith.subf %23, %25 : vector<32x16xf32>
    %35 = arith.mulf %34, %33 : vector<32x16xf32>
    %36 = vector.broadcast %8 : vector<1x16xf32> to vector<32x16xf32>
    %37 = arith.mulf %35, %36 : vector<32x16xf32>
    %38 = vector.broadcast %9 : vector<1x16xf32> to vector<32x16xf32>
    %39 = arith.addf %37, %38 : vector<32x16xf32>
    %cst_17 = arith.constant 2.000000e+01 : f32
    %40 = vector.broadcast %cst_17 : f32 to vector<32x16xf32>
    %41 = arith.minimumf %39, %40 : vector<32x16xf32>
    %42 = math.exp %41 : vector<32x16xf32>
    %cst_18 = arith.constant 2.000000e+00 : f32
    %43 = vector.broadcast %cst_18 : f32 to vector<32x16xf32>
    %44 = arith.addf %42, %43 : vector<32x16xf32>
    %45 = arith.mulf %42, %44 : vector<32x16xf32>
    %cst_19 = arith.constant 2.000000e+00 : f32
    %46 = vector.broadcast %cst_19 : f32 to vector<32x16xf32>
    %47 = arith.addf %45, %46 : vector<32x16xf32>
    %48 = tpu.reciprocal %47 {approx = true} : vector<32x16xf32> -> vector<32x16xf32>
    %49 = arith.mulf %45, %48 : vector<32x16xf32>
    %cst_20 = arith.constant 2.000000e+01 : f32
    %50 = vector.broadcast %cst_20 : f32 to vector<32x16xf32>
    %51 = arith.cmpf ogt, %39, %50 : vector<32x16xf32>
    %cst_21 = arith.constant 1.000000e+00 : f32
    %52 = vector.broadcast %cst_21 : f32 to vector<32x16xf32>
    %53 = arith.select %51, %52, %49 : vector<32x16xi1>, vector<32x16xf32>
    %54 = arith.mulf %39, %53 : vector<32x16xf32>
    %c0_22 = arith.constant 0 : index
    %c0_23 = arith.constant 0 : index
    %55 = vector.load %arg2[%c0_22, %c0_23] : memref<2x32xf32, #tpu.memory_space<vmem>>, vector<2x32xf32>
    %cst_24 = arith.constant 2.000000e+01 : f32
    %56 = vector.broadcast %cst_24 : f32 to vector<2x32xf32>
    %57 = arith.minimumf %55, %56 : vector<2x32xf32>
    %58 = math.exp %57 : vector<2x32xf32>
    %cst_25 = arith.constant 2.000000e+00 : f32
    %59 = vector.broadcast %cst_25 : f32 to vector<2x32xf32>
    %60 = arith.addf %58, %59 : vector<2x32xf32>
    %61 = arith.mulf %58, %60 : vector<2x32xf32>
    %cst_26 = arith.constant 2.000000e+00 : f32
    %62 = vector.broadcast %cst_26 : f32 to vector<2x32xf32>
    %63 = arith.addf %61, %62 : vector<2x32xf32>
    %64 = tpu.reciprocal %63 {approx = true} : vector<2x32xf32> -> vector<2x32xf32>
    %65 = arith.mulf %61, %64 : vector<2x32xf32>
    %cst_27 = arith.constant 2.000000e+01 : f32
    %66 = vector.broadcast %cst_27 : f32 to vector<2x32xf32>
    %67 = arith.cmpf ogt, %55, %66 : vector<2x32xf32>
    %cst_28 = arith.constant 1.000000e+00 : f32
    %68 = vector.broadcast %cst_28 : f32 to vector<2x32xf32>
    %69 = arith.select %67, %68, %65 : vector<2x32xi1>, vector<2x32xf32>
    %70 = arith.mulf %55, %69 : vector<2x32xf32>
    %cst_29 = arith.constant dense<0.000000e+00> : vector<2x16xf32>
    %71 = tpu.matmul %70, %2, %cst_29 {dimension_numbers = #tpu.dot_dimension_numbers<[1], [0], [0], [1], [0, 0, 1, 1], [], []>} : vector<2x32xf32>, vector<32x16xf32>, vector<2x16xf32> -> vector<2x16xf32>
    %72 = vector.broadcast %10 : vector<1x16xf32> to vector<2x16xf32>
    %73 = arith.addf %71, %72 : vector<2x16xf32>
    %74 = tpu.iota {dimensions = array<i32: 0>} : vector<32x1xi32>
    %75 = vector.extract_strided_slice %73 {offsets = [0, 0], sizes = [1, 16], strides = [1, 1]} : vector<2x16xf32> to vector<1x16xf32>
    %76 = vector.shape_cast %75 : vector<1x16xf32> to vector<1x16xf32>
    %77 = vector.broadcast %76 : vector<1x16xf32> to vector<32x16xf32>
    %c16_i32 = arith.constant 16 : i32
    %78 = vector.broadcast %c16_i32 : i32 to vector<32x1xi32>
    %79 = arith.cmpi sge, %74, %78 : vector<32x1xi32>
    %80 = vector.extract_strided_slice %73 {offsets = [1, 0], sizes = [1, 16], strides = [1, 1]} : vector<2x16xf32> to vector<1x16xf32>
    %81 = vector.shape_cast %79 : vector<32x1xi1> to vector<32x1xi1>
    %82 = vector.broadcast %81 : vector<32x1xi1> to vector<32x16xi1>
    %83 = vector.shape_cast %80 : vector<1x16xf32> to vector<1x16xf32>
    %84 = vector.broadcast %83 : vector<1x16xf32> to vector<32x16xf32>
    %85 = arith.select %82, %84, %77 : vector<32x16xi1>, vector<32x16xf32>
    %86 = arith.addf %54, %85 : vector<32x16xf32>
    %cst_30 = arith.constant dense<0.000000e+00> : vector<64x16xf32>
    %87 = tpu.matmul %15, %86, %cst_30 {dimension_numbers = #tpu.dot_dimension_numbers<[1], [0], [0], [1], [0, 0, 1, 1], [], []>} : vector<64x32xf32>, vector<32x16xf32>, vector<64x16xf32> -> vector<64x16xf32>
    %88 = vector.extract_strided_slice %87 {offsets = [0, 0], sizes = [32, 16], strides = [1, 1]} : vector<64x16xf32> to vector<32x16xf32>
    %89 = vector.extract_strided_slice %87 {offsets = [32, 0], sizes = [32, 16], strides = [1, 1]} : vector<64x16xf32> to vector<32x16xf32>
    %90 = tpu.concatenate %88, %86, %89 in 1 : vector<32x16xf32>, vector<32x16xf32>, vector<32x16xf32> -> vector<32x48xf32>
    %cst_31 = arith.constant dense<0.000000e+00> : vector<32x16xf32>
    %91 = tpu.matmul %90, %3, %cst_31 {dimension_numbers = #tpu.dot_dimension_numbers<[1], [0], [0], [1], [0, 0, 1, 1], [], []>} : vector<32x48xf32>, vector<48x16xf32>, vector<32x16xf32> -> vector<32x16xf32>
    %92 = vector.broadcast %11 : vector<1x16xf32> to vector<32x16xf32>
    %93 = arith.addf %91, %92 : vector<32x16xf32>
    %cst_32 = arith.constant dense<0.000000e+00> : vector<32x16xf32>
    %94 = tpu.matmul %16, %93, %cst_32 {dimension_numbers = #tpu.dot_dimension_numbers<[1], [0], [0], [1], [0, 0, 1, 1], [], []>} : vector<32x32xf32>, vector<32x16xf32>, vector<32x16xf32> -> vector<32x16xf32>
    %cst_33 = arith.constant dense<0.000000e+00> : vector<32x16xf32>
    %95 = tpu.matmul %94, %5, %cst_33 {dimension_numbers = #tpu.dot_dimension_numbers<[1], [0], [0], [1], [0, 0, 1, 1], [], []>} : vector<32x16xf32>, vector<16x16xf32>, vector<32x16xf32> -> vector<32x16xf32>
    %96 = arith.mulf %93, %93 : vector<32x16xf32>
    %cst_34 = arith.constant dense<0.000000e+00> : vector<32x16xf32>
    %97 = tpu.matmul %16, %96, %cst_34 {dimension_numbers = #tpu.dot_dimension_numbers<[1], [0], [0], [1], [0, 0, 1, 1], [], []>} : vector<32x32xf32>, vector<32x16xf32>, vector<32x16xf32> -> vector<32x16xf32>
    %cst_35 = arith.constant dense<0.000000e+00> : vector<32x16xf32>
    %98 = tpu.matmul %97, %5, %cst_35 {dimension_numbers = #tpu.dot_dimension_numbers<[1], [0], [0], [1], [0, 0, 1, 1], [], []>} : vector<32x16xf32>, vector<16x16xf32>, vector<32x16xf32> -> vector<32x16xf32>
    %99 = arith.mulf %95, %95 : vector<32x16xf32>
    %100 = arith.subf %98, %99 : vector<32x16xf32>
    %cst_36 = arith.constant 9.99999974E-6 : f32
    %101 = vector.broadcast %cst_36 : f32 to vector<32x16xf32>
    %102 = arith.addf %100, %101 : vector<32x16xf32>
    %103 = math.rsqrt %102 : vector<32x16xf32>
    %104 = arith.subf %93, %95 : vector<32x16xf32>
    %105 = arith.mulf %104, %103 : vector<32x16xf32>
    %106 = vector.broadcast %12 : vector<1x16xf32> to vector<32x16xf32>
    %107 = arith.mulf %105, %106 : vector<32x16xf32>
    %108 = vector.broadcast %13 : vector<1x16xf32> to vector<32x16xf32>
    %109 = arith.addf %107, %108 : vector<32x16xf32>
    %cst_37 = arith.constant 2.000000e+01 : f32
    %110 = vector.broadcast %cst_37 : f32 to vector<32x16xf32>
    %111 = arith.minimumf %109, %110 : vector<32x16xf32>
    %112 = math.exp %111 : vector<32x16xf32>
    %cst_38 = arith.constant 2.000000e+00 : f32
    %113 = vector.broadcast %cst_38 : f32 to vector<32x16xf32>
    %114 = arith.addf %112, %113 : vector<32x16xf32>
    %115 = arith.mulf %112, %114 : vector<32x16xf32>
    %cst_39 = arith.constant 2.000000e+00 : f32
    %116 = vector.broadcast %cst_39 : f32 to vector<32x16xf32>
    %117 = arith.addf %115, %116 : vector<32x16xf32>
    %118 = tpu.reciprocal %117 {approx = true} : vector<32x16xf32> -> vector<32x16xf32>
    %119 = arith.mulf %115, %118 : vector<32x16xf32>
    %cst_40 = arith.constant 2.000000e+01 : f32
    %120 = vector.broadcast %cst_40 : f32 to vector<32x16xf32>
    %121 = arith.cmpf ogt, %109, %120 : vector<32x16xf32>
    %cst_41 = arith.constant 1.000000e+00 : f32
    %122 = vector.broadcast %cst_41 : f32 to vector<32x16xf32>
    %123 = arith.select %121, %122, %119 : vector<32x16xi1>, vector<32x16xf32>
    %124 = arith.mulf %109, %123 : vector<32x16xf32>
    %cst_42 = arith.constant dense<0.000000e+00> : vector<32x16xf32>
    %125 = tpu.matmul %0, %4, %cst_42 {dimension_numbers = #tpu.dot_dimension_numbers<[1], [0], [0], [1], [0, 0, 1, 1], [], []>} : vector<32x8xf32>, vector<8x16xf32>, vector<32x16xf32> -> vector<32x16xf32>
    %126 = arith.addf %124, %125 : vector<32x16xf32>
    %127 = vector.broadcast %14 : vector<1x16xf32> to vector<32x16xf32>
    %128 = arith.addf %126, %127 : vector<32x16xf32>
    %c0_43 = arith.constant 0 : index
    %c0_44 = arith.constant 0 : index
    %129 = vector.load %arg5[%c0_43, %c0_44] : memref<32x16xf32, #tpu.memory_space<vmem>>, vector<32x16xf32>
    tpu.vector_store %arg5[%c0_43, %c0_44], %128 {strides = array<i32>} : memref<32x16xf32, #tpu.memory_space<vmem>>, vector<32x16xf32>,
    return
  }
  func.func @transform_0(%arg0: i32) -> (i32, i32) {
    %c0_i32 = arith.constant 0 : i32
    %c0_i32_0 = arith.constant 0 : i32
    %c0_i32_1 = arith.constant 0 : i32
    return %c0_i32, %c0_i32_0 : i32, i32
  }
  func.func @transform_1(%arg0: i32) -> (i32, i32) {
    %c0_i32 = arith.constant 0 : i32
    %c0_i32_0 = arith.constant 0 : i32
    %c0_i32_1 = arith.constant 0 : i32
    return %c0_i32, %c0_i32_0 : i32, i32
  }
  func.func @transform_2(%arg0: i32) -> (i32, i32) {
    %c0_i32 = arith.constant 0 : i32
    %c0_i32_0 = arith.constant 0 : i32
    %c0_i32_1 = arith.constant 0 : i32
    return %c0_i32, %c0_i32_0 : i32, i32
  }
  func.func @transform_3(%arg0: i32) -> (i32, i32) {
    %c0_i32 = arith.constant 0 : i32
    %c0_i32_0 = arith.constant 0 : i32
    %c0_i32_1 = arith.constant 0 : i32
    return %c0_i32, %c0_i32_0 : i32, i32
  }
  func.func @transform_4(%arg0: i32) -> (i32, i32) {
    %c0_i32 = arith.constant 0 : i32
    %c0_i32_0 = arith.constant 0 : i32
    %c0_i32_1 = arith.constant 0 : i32
    return %c0_i32, %c0_i32_0 : i32, i32
  }
}

</mosaic_0001>

<bundles_post_ra>
// kernel: diffusion_cond_res_block.1
= control target key start
LH: loop header
LB: loop body
LE: loop exit
PB: predicated region body
PF: predicated region fallthrough
CT: control target
= control target key end

     0   :  { %vm51_vm0 = vcmask 261120   ;;  %s2262_s25 = smov 8   ;;  %s2680_s0 = inlined_call_operand.vmem [shape: f32[32,8], index: 0, kind: input, shape index: {}]   ;;  %s2681_s1 = inlined_call_operand.vmem [shape: f32[2,32], index: 1, kind: input, shape index: {}]   ;;  %s2682_s2 = inlined_call_operand.vmem [shape: f32[136,16], index: 2, kind: input, shape index: {}]   ;;  %s2683_s3 = inlined_call_operand.vmem [shape: f32[96,32], index: 3, kind: input, shape index: {}]   ;;  %s2684_s4 = inlined_call_operand.hbm [shape: f32[32,16], index: 4, kind: output, shape index: {}]  }
   0x1   :  { %v2298_v0 = vld [vmem:[%s2680_s0] sm:$0xff]  ;;  %v2303_v1 = vld [vmem:[%s2680_s0 + $0x8] sm:$0xff]  ;;  %v2308_v2 = vld [vmem:[%s2680_s0 + $0x10] sm:$0xff] }
   0x2   :  { %v2088_v3 = vpack.c.bf16 %v2303_v1, %v2298_v0  ;;  %v2315_v4 = vld [vmem:[%s2680_s0 + $0x18] sm:$0xff]  ;;  %v2320_v5 = vld [vmem:[%s2683_s3] sm:$0xff]  ;;  %185 = vrot.lane.b32.xlu0 %v2298_v0, %s2262_s25 }
   0x3   :  { %v2092_v6 = vpack.c.bf16 %v2315_v4, %v2308_v2  ;;  %1911 = vmatprep.mubr.msk.f32.mxu0 %vm51_vm0, %v2320_v5 }
   0x4   :  { %2089 = vmatprep.subr.bf16.mxu0 %v2088_v3 }
   0x5   :  { %2091 = vmatpush3.bf16.msra.mxu0 %v2088_v3 }
   0x6   :  { %9 = vsyncpa [#allocation3], 0  ;;  %2093 = vmatprep.subr.bf16.mxu0 %v2092_v6  ;;  %187 = vrot.lane.b32.xlu0 %v2303_v1, %s2262_s25  ;;  %v2333_v7 = vld [vmem:[%s2683_s3 + $0x8] sm:$0xff]  ;;  %v2338_v8 = vld [vmem:[%s2683_s3 + $0x10] sm:$0xff]  ;;  %s2263_s19 = smov 16   ;;  %vm213_vm1 = vcmask 64512   ;;  %v223_v43 = vlaneseq }
   0x7   :  { %v2349_v9 = vld [vmem:[%s2683_s3 + $0x18] sm:$0xff]  ;;  %v2354_v10 = vld [vmem:[%s2683_s3 + $0x20] sm:$0xff]  ;;  %v2363_v11 = vld [vmem:[%s2683_s3 + $0x28] sm:$0xff]  ;;  %vm218_vm2 = vcmask 130048   ;;  %vm227_vm3 = vcmask 195584   ;;  %vm2265_vm4 = vmmov 0  }
   0x8   :  { %v2368_v12 = vld [vmem:[%s2683_s3 + $0x30] sm:$0xff]  ;;  %v2377_v13 = vld [vmem:[%s2683_s3 + $0x38] sm:$0xff]  ;;  %v22_v14 = vld [vmem:[%s2682_s2] sm:$0xff]  ;;  %v2417_v44 = vshrl.u32 %v223_v43, 7  ;;  %s2267_s28 = smov 32   ;;  %vm1060_vm10 = vcmask 392192  }
   0x9   :  { %2095 = vmatpush3.bf16.msra.mxu0 %v2092_v6  ;;  %v23_v15 = vld [vmem:[%s2682_s2 + $0x8] sm:$0xff]  ;;  %v24_v17 = vld [vmem:[%s2682_s2 + $0x10] sm:$0xff]  ;;  %v2411_v42 = vld [vmem:[%s2683_s3 + $0x40] sm:$0xff] }
   0xa   :  { %189 = vrot.lane.b32.xlu0 %v2308_v2, %s2262_s25  ;;  %v2096_v16 = vpack.c.bf16 %v23_v15, %v22_v14  ;;  %v225_v45 = vsub.s32 0, %v2417_v44  ;;  %v2423_v46 = vld [vmem:[%s2682_s2 + $0x80] sm:$0xff]  ;;  %v36_v59 = vld [vmem:[%s2682_s2 + $0x70] sm:$0xff]  ;;  %v37_v60 = vld [vmem:[%s2682_s2 + $0x78] sm:$0xff] }
   0xb   :  { %v2454_v6 = vpack.c.bf16 %v37_v60, %v36_v59  ;;  %v2459_v15 = vld [vmem:[%s2683_s3 + $0x48] sm:$0xff] }
   0xc   :  { %1912 = vmatmul.mubr.msk.f32.vlgmr.msra.gmra.mrb[0].mxu0 %vm51_vm0, %v2333_v7  ;;  %2097 = vmatprep.subr.bf16.mxu1 %v2096_v16  ;;  %v226_v47 = vrot.slane %v2423_v46, %v225_v45 }
   0xd   :  { %1914 = vmatprep.mubr.msk.f32.mxu0 %vm51_vm0, %v2338_v8  ;;  %2099 = vmatpush3.bf16.msra.mxu1 %v2096_v16  ;;  %v2464_v16 = vld [vmem:[%s2683_s3 + $0x50] sm:$0xff] }
   0xe   :  { %1927 = vmatprep.subr.mxu1 %v24_v17 }
  0x10   :  { %1915 = vmatmul.mubr.msk.f32.gmra.mrb[2].mxu0 %vm51_vm0, %v2349_v9 }
  0x11   :  { %1917 = vmatprep.mubr.msk.f32.mxu0 %vm51_vm0, %v2354_v10  ;;  %1928 = vmatpush3.msra.mxu1 %v24_v17  ;;  %v2474_v17 = vld [vmem:[%s2683_s3 + $0x58] sm:$0xff] }
  0x14   :  { %1918 = vmatmul.mubr.msk.f32.gmra.mrb[4].mxu0 %vm51_vm0, %v2363_v11 }
  0x15   :  { %1920 = vmatprep.mubr.msk.f32.mxu0 %vm51_vm0, %v2368_v12 }
  0x18   :  { %1921 = vmatmul.mubr.msk.f32.gmra.mrb[6].mxu0 %vm51_vm0, %v2377_v13 }
  0x19   :  { %1967 = vmatprep.mubr.msk.f32.mxu0 %vm51_vm0, %v2411_v42 }
  0x74   :  { %v186_v26 = vpop.permute.xlu0 %185 }
  0x78   :  { %v188_v27 = vpop.permute.xlu0 %187 }
  0x7c   :  { %v190_v29 = vpop.permute.xlu0 %189 }
  0xdf   :  { %v1913_v18 = vpop.f32.mrb[0].mxu0 }
  0xe0   :  { %v142_v19 = vpop.f32.mrb[1].mxu0  ;;  %v215_v32 = vsel %vm213_vm1, %v1913_v18, %v188_v27  ;;  %v25_v18 = vld [vmem:[%s2682_s2 + $0x18] sm:$0xff] }
  0xe1   :  { %v214_v30 = vsel %vm213_vm1, %v142_v19, %v186_v26  ;;  %v26_v19 = vld [vmem:[%s2682_s2 + $0x20] sm:$0xff] }
  0xe3   :  { %v1916_v20 = vpop.f32.mrb[2].mxu0 }
  0xe4   :  { %v152_v21 = vpop.f32.mrb[3].mxu0 }
  0xe5   :  { %v216_v33 = vsel %vm213_vm1, %v152_v21, %v190_v29  ;;  %v2264_v21 = vmov 0.0|0.0  }
  0xe7   :  { %v1919_v22 = vpop.f32.mrb[4].mxu0 }
  0xe8   :  { %203 = vrot.lane.b32.xlu1 %v1919_v22, %s2263_s19  ;;  %v162_v23 = vpop.f32.mrb[5].mxu0  ;;  %v2125_v22 = vpack.c.bf16 %v26_v19, %v25_v18 }
  0xeb   :  { %v1922_v24 = vpop.f32.mrb[6].mxu0 }
  0xec   :  { %201 = vrot.lane.b32.xlu1 %v162_v23, %s2263_s19  ;;  %v172_v25 = vpop.f32.mrb[7].mxu0  ;;  %v28_v23 = vld [vmem:[%s2682_s2 + $0x30] sm:$0xff] }
  0xed   :  { %205 = vrot.lane.b32.xlu0 %v172_v25, %s2263_s19  ;;  %v789_v25 = vld [vmem:[%s2681_s1] sm:$0x3] }
  0xee   :  { %v790_v26 = vmin.f32 %v789_v25, 20.0  ;;  %vm798_vm5 = vcmp.gt.f32.partialorder %v789_v25, 20.0 }
  0xf0   :  { %191 = vrot.lane.b32.xlu1 %v2315_v4, %s2262_s25 }
  0xf4   :  { %207 = vrot.lane.b32.xlu1 %v1922_v24, %s2263_s19  ;;  %v2266_v24 = vmov 0.0  }
 0x15a   :  { %v204_v28 = vpop.permute.xlu1 %203 }
 0x15b   :  { %v220_v36 = vsel %vm218_vm2, %v215_v32, %v204_v28  ;;  %v791_v28 = vmul.f32 1.442695, %v790_v26  ;;  %v731_v26 = vsub.s32 1, %v2417_v44 }
 0x15d   :  { %2186 = vpow2.f32 %v791_v28 }
 0x15e   :  { %v202_v31 = vpop.permute.xlu1 %201 }
 0x15f   :  { %v206_v34 = vpop.permute.xlu0 %205  ;;  %v219_v35 = vsel %vm218_vm2, %v214_v30, %v202_v31 }
 0x160   :  { %v221_v37 = vsel %vm218_vm2, %v216_v33, %v206_v34  ;;  %1929 = vmatprep.mubr.msk.f32.mxu1 %vm227_vm3, %v219_v35 }
 0x161   :  { %1930 = vmatmul.mubr.msk.f32.vlgmr.msra.gmra.mrb[0].mxu1 %vm227_vm3, %v220_v36 }
 0x162   :  { %v192_v38 = vpop.permute.xlu1 %191  ;;  %1932 = vmatprep.mubr.msk.f32.mxu1 %vm227_vm3, %v221_v37 }
 0x163   :  { %v217_v39 = vsel %vm213_vm1, %v1916_v20, %v192_v38  ;;  %v27_v20 = vld [vmem:[%s2682_s2 + $0x28] sm:$0xff] }
 0x164   :  { %v2128_v27 = vpack.c.bf16 %v28_v23, %v27_v20 }
 0x166   :  { %v208_v40 = vpop.permute.xlu1 %207 }
 0x167   :  { %v222_v41 = vsel %vm218_vm2, %v217_v39, %v208_v40  ;;  %v2187_v29 = vpop.eup %2186 }
 0x168   :  { %1933 = vmatmul.mubr.msk.f32.gmra.mrb[2].mxu1 %vm227_vm3, %v222_v41  ;;  %v793_v30 = vadd.f32 2.0, %v2187_v29 }
 0x169   :  { %1943 = vmatprep.mubr.msk.f32.mxu1 %vm51_vm0, %v2411_v42 }
 0x16a   :  { %v794_v31 = vmul.f32 %v2187_v29, %v793_v30  ;;  %v732_v29 = vrot.slane %v2423_v46, %v731_v26 }
 0x16c   :  { %v795_v32 = vadd.f32 2.0, %v794_v31 }
 0x16e   :  { %2188 = vrcp.f32 %v795_v32 }
 0x178   :  { %v2189_v33 = vpop.eup %2188 }
 0x179   :  { %v797_v34 = vmul.f32 %v2189_v33, %v794_v31 }
 0x17b   :  { %v799_v35 = vsel %vm798_vm5, 1.0, %v797_v34 }
 0x17c   :  { %v800_v36 = vmul.f32 %v799_v35, %v789_v25 }
 0x234   :  { %v1931_v48 = vpop.f32.mrb[0].mxu1 }
 0x235   :  { %v2428_v49 = vadd.f32 %v1931_v48, %v226_v47  ;;  %v306_v50 = vpop.f32.mrb[1].mxu1 }
 0x236   :  { %v2430_v51 = vadd.f32 %v306_v50, %v226_v47 }
 0x237   :  { %v520_v52 = vmul.f32 %v2428_v49, %v2428_v49 }
 0x238   :  { %v519_v53 = vmul.f32 %v2430_v51, %v2430_v51  ;;  %v2100_v54 = vpack.c.bf16 %v2428_v49, %v2430_v51 }
 0x23a   :  { %2101 = vmatprep.subr.bf16.mxu1 %v2100_v54  ;;  %v2112_v55 = vpack.c.bf16 %v520_v52, %v519_v53 }
 0x23b   :  { %v1934_v56 = vpop.f32.mrb[2].mxu1  ;;  %2103 = vmatpush3.bf16.msra.mxu1 %v2100_v54 }
 0x23c   :  { %v2438_v57 = vadd.f32 %v1934_v56, %v226_v47  ;;  %v316_v58 = vpop.f32.mrb[3].mxu1  ;;  %2113 = vmatprep.subr.bf16.mxu0 %v2112_v55 }
 0x23d   :  { %v2446_v61 = vadd.f32 %v316_v58, %v226_v47  ;;  %2115 = vmatpush3.bf16.msra.mxu0 %v2112_v55 }
 0x23e   :  { %v522_v62 = vmul.f32 %v2438_v57, %v2438_v57 }
 0x23f   :  { %v521_v63 = vmul.f32 %v2446_v61, %v2446_v61  ;;  %v2104_v3 = vpack.c.bf16 %v2438_v57, %v2446_v61 }
 0x241   :  { %2105 = vmatprep.subr.bf16.mxu1 %v2104_v3  ;;  %v2116_v14 = vpack.c.bf16 %v522_v62, %v521_v63 }
 0x242   :  { %2107 = vmatpush3.bf16.msra.mxu1 %v2104_v3 }
 0x243   :  { %2117 = vmatprep.subr.bf16.mxu0 %v2116_v14  ;;  %2109 = vmatprep.subr.bf16.mxu1 %v2454_v6 }
 0x244   :  { %2119 = vmatpush3.bf16.msra.mxu0 %v2116_v14 }
 0x245   :  { %1944 = vmatmul.mubr.msk.f32.vlgmr.msra.gmra.mrb[4].mxu1 %vm51_vm0, %v2459_v15  ;;  %2124 = vmatprep.subr.bf16.mxu0 %v2264_v21 }
 0x246   :  { %1946 = vmatprep.mubr.msk.f32.mxu1 %vm51_vm0, %v2464_v16  ;;  %2111 = vmatpush3.bf16.msra.mxu1 %v2454_v6 }
 0x247   :  { %1968 = vmatmul.mubr.msk.f32.vlgmr.msra.gmra.mrb[8].mxu0 %vm51_vm0, %v2459_v15  ;;  %2121 = vmatprep.subr.bf16.mxu1 %v2454_v6 }
 0x248   :  { %1970 = vmatprep.mubr.msk.f32.mxu0 %vm51_vm0, %v2464_v16  ;;  %2126 = vmatpush3.bf16.msra.mxu0 %v2125_v22 }
 0x249   :  { %1947 = vmatmul.mubr.msk.f32.gmra.mrb[6].mxu1 %vm51_vm0, %v2474_v17  ;;  %2127 = vmatprep.subr.bf16.mxu0 %v2264_v21 }
 0x24b   :  { %1971 = vmatmul.mubr.msk.f32.gmra.mrb[10].mxu0 %vm51_vm0, %v2474_v17 }
 0x24c   :  { %1991 = vmatprep.mubr.msk.f32.mxu0 %vm2265_vm4, %v2266_v24  ;;  %2129 = vmatpush3.bf16.msra.mxu0 %v2128_v27  ;;  %v739_v27 = vsub.s32 2, %v2417_v44 }
 0x24e   :  { %v740_v34 = vrot.slane %v2423_v46, %v739_v27  ;;  %v803_v27 = vsub.s32 3, %v2417_v44 }
 0x24f   :  { %1992 = vmatmul.mubr.msk.f32.vlgmr.msra.gmra.mrb[12].mxu0 %vm51_vm0, %v800_v36 }
 0x318   :  { %v1945_v37 = vpop.f32.mrb[4].mxu1 }
 0x319   :  { %v403_v38 = vpop.f32.mrb[5].mxu1 }
 0x31a   :  { %1953 = vmatprep.mubr.msk.f32.mxu1 %vm218_vm2, %v403_v38  ;;  %v1969_v39 = vpop.f32.mrb[8].mxu0 }
 0x31b   :  { %1954 = vmatmul.mubr.msk.f32.vlgmr.msra.gmra.mrb[8].mxu1 %vm218_vm2, %v1945_v37  ;;  %v589_v40 = vpop.f32.mrb[9].mxu0 }
 0x31c   :  { %v1948_v41 = vpop.f32.mrb[6].mxu1  ;;  %2123 = vmatpush3.bf16.msra.mxu1 %v2454_v6 }
 0x31d   :  { %v413_v43 = vpop.f32.mrb[7].mxu1 }
 0x31e   :  { %1956 = vmatprep.mubr.msk.f32.mxu1 %vm218_vm2, %v413_v43  ;;  %v1972_v47 = vpop.f32.mrb[10].mxu0 }
 0x31f   :  { %1957 = vmatmul.mubr.msk.f32.gmra.mrb[10].mxu1 %vm218_vm2, %v1948_v41  ;;  %v599_v48 = vpop.f32.mrb[11].mxu0 }
 0x320   :  { %1977 = vmatprep.mubr.msk.f32.mxu1 %vm218_vm2, %v589_v40 }
 0x322   :  { %v2513_v50 = vpop.f32.mrb[12].mxu0 }
 0x323   :  { %1978 = vmatmul.mubr.msk.f32.vlgmr.msra.gmra.mrb[12].mxu1 %vm218_vm2, %v1969_v39  ;;  %v1993_v52 = vpop.f32.mrb[13].mxu0 }
 0x324   :  { %1980 = vmatprep.mubr.msk.f32.mxu1 %vm218_vm2, %v599_v48 }
 0x327   :  { %1981 = vmatmul.mubr.msk.f32.gmra.mrb[14].mxu1 %vm218_vm2, %v1972_v47 }
 0x328   :  { %2002 = vmatprep.mubr.msk.f32.mxu1 %vm51_vm0, %v2320_v5 }
 0x3ee   :  { %v1955_v53 = vpop.f32.mrb[8].mxu1 }
 0x3ef   :  { %v500_v54 = vpop.f32.mrb[9].mxu1  ;;  %v706_v58 = vmul.f32 %v1955_v53, %v1955_v53  ;;  %v722_v28 = vsub.f32 %v2428_v49, %v1955_v53 }
 0x3f0   :  { %v705_v59 = vmul.f32 %v500_v54, %v500_v54  ;;  %v721_v31 = vsub.f32 %v2430_v51, %v500_v54 }
 0x3f2   :  { %v1958_v55 = vpop.f32.mrb[10].mxu1 }
 0x3f3   :  { %v510_v56 = vpop.f32.mrb[11].mxu1  ;;  %v708_v14 = vmul.f32 %v1958_v55, %v1958_v55  ;;  %v724_v36 = vsub.f32 %v2438_v57, %v1958_v55 }
 0x3f4   :  { %v707_v19 = vmul.f32 %v510_v56, %v510_v56  ;;  %v723_v39 = vsub.f32 %v2446_v61, %v510_v56 }
 0x3f6   :  { %v1979_v60 = vpop.f32.mrb[12].mxu1 }
 0x3f7   :  { %v710_v62 = vsub.f32 %v1979_v60, %v706_v58  ;;  %v686_v63 = vpop.f32.mrb[13].mxu1 }
 0x3f8   :  { %v709_v3 = vsub.f32 %v686_v63, %v705_v59 }
 0x3f9   :  { %v714_v18 = vadd.f32 1e-05, %v710_v62 }
 0x3fa   :  { %v713_v20 = vadd.f32 1e-05, %v709_v3  ;;  %v1982_v21 = vpop.f32.mrb[14].mxu1 }
 0x3fb   :  { %2190 = vrsqrt.f32 %v714_v18  ;;  %v712_v5 = vsub.f32 %v1982_v21, %v708_v14  ;;  %v696_v22 = vpop.f32.mrb[15].mxu1 }
 0x3fc   :  { %2192 = vrsqrt.f32 %v713_v20  ;;  %v711_v23 = vsub.f32 %v696_v22, %v707_v19 }
 0x3fd   :  { %v716_v24 = vadd.f32 1e-05, %v712_v5 }
 0x3fe   :  { %v715_v25 = vadd.f32 1e-05, %v711_v23 }
 0x3ff   :  { %2194 = vrsqrt.f32 %v716_v24 }
 0x400   :  { %2196 = vrsqrt.f32 %v715_v25 }
 0x405   :  { %v2191_v30 = vpop.eup %2190 }
 0x406   :  { %v2193_v32 = vpop.eup %2192  ;;  %v726_v33 = vmul.f32 %v2191_v30, %v722_v28 }
 0x407   :  { %v725_v35 = vmul.f32 %v2193_v32, %v721_v31  ;;  %v804_v32 = vrot.slane %v2423_v46, %v803_v27 }
 0x408   :  { %v734_v37 = vmul.f32 %v732_v29, %v726_v33 }
 0x409   :  { %v2195_v38 = vpop.eup %2194  ;;  %v733_v40 = vmul.f32 %v732_v29, %v725_v35  ;;  %v875_v33 = vadd.f32 %v2513_v50, %v804_v32 }
 0x40a   :  { %v2197_v49 = vpop.eup %2196  ;;  %v728_v41 = vmul.f32 %v2195_v38, %v724_v36  ;;  %v742_v43 = vadd.f32 %v740_v34, %v734_v37 }
 0x40b   :  { %v727_v47 = vmul.f32 %v2197_v49, %v723_v39  ;;  %v741_v48 = vadd.f32 %v740_v34, %v733_v40  ;;  %v886_v37 = vrot.slane %v875_v33, %v225_v45 }
 0x40c   :  { %v746_v52 = vmin.f32 %v742_v43, 20.0  ;;  %v736_v53 = vmul.f32 %v732_v29, %v728_v41  ;;  %vm778_vm6 = vcmp.gt.f32.partialorder %v742_v43, 20.0 }
 0x40d   :  { %v745_v51 = vmin.f32 %v741_v48, 20.0  ;;  %v735_v54 = vmul.f32 %v732_v29, %v727_v47  ;;  %vm777_vm7 = vcmp.gt.f32.partialorder %v741_v48, 20.0 }
 0x40e   :  { %v751_v58 = vmul.f32 1.442695, %v746_v52  ;;  %v744_v59 = vadd.f32 %v740_v34, %v736_v53 }
 0x40f   :  { %v749_v60 = vmul.f32 1.442695, %v745_v51  ;;  %v743_v62 = vadd.f32 %v740_v34, %v735_v54 }
 0x410   :  { %2198 = vpow2.f32 %v751_v58  ;;  %v748_v57 = vmin.f32 %v744_v59, 20.0  ;;  %vm780_vm8 = vcmp.gt.f32.partialorder %v744_v59, 20.0 }
 0x411   :  { %2200 = vpow2.f32 %v749_v60  ;;  %v747_v55 = vmin.f32 %v743_v62, 20.0  ;;  %vm779_vm9 = vcmp.gt.f32.partialorder %v743_v62, 20.0  ;;  %v902_v60 = vrot.slane %v875_v33, %v731_v26  ;;  %v34_v26 = vld [vmem:[%s2682_s2 + $0x60] sm:$0xff] }
 0x412   :  { %v755_v63 = vmul.f32 1.442695, %v748_v57 }
 0x413   :  { %v753_v61 = vmul.f32 1.442695, %v747_v55 }
 0x414   :  { %2202 = vpow2.f32 %v755_v63 }
 0x415   :  { %2204 = vpow2.f32 %v753_v61 }
 0x41a   :  { %v2199_v56 = vpop.eup %2198 }
 0x41b   :  { %v2201_v3 = vpop.eup %2200  ;;  %v758_v14 = vadd.f32 2.0, %v2199_v56 }
 0x41c   :  { %v757_v18 = vadd.f32 2.0, %v2201_v3 }
 0x41d   :  { %v762_v19 = vmul.f32 %v2199_v56, %v758_v14 }
 0x41e   :  { %v2203_v20 = vpop.eup %2202  ;;  %v761_v21 = vmul.f32 %v2201_v3, %v757_v18 }
 0x41f   :  { %v2205_v5 = vpop.eup %2204  ;;  %v766_v22 = vadd.f32 2.0, %v762_v19  ;;  %v760_v23 = vadd.f32 2.0, %v2203_v20 }
 0x420   :  { %v765_v24 = vadd.f32 2.0, %v761_v21  ;;  %v759_v25 = vadd.f32 2.0, %v2205_v5 }
 0x421   :  { %2206 = vrcp.f32 %v766_v22  ;;  %v764_v28 = vmul.f32 %v2203_v20, %v760_v23 }
 0x422   :  { %2208 = vrcp.f32 %v765_v24  ;;  %v763_v29 = vmul.f32 %v2205_v5, %v759_v25 }
 0x423   :  { %v768_v30 = vadd.f32 2.0, %v764_v28 }
 0x424   :  { %v767_v31 = vadd.f32 2.0, %v763_v29 }
 0x425   :  { %2210 = vrcp.f32 %v768_v30 }
 0x426   :  { %2212 = vrcp.f32 %v767_v31 }
 0x42b   :  { %v2207_v34 = vpop.eup %2206 }
 0x42c   :  { %v2209_v35 = vpop.eup %2208  ;;  %v774_v36 = vmul.f32 %v2207_v34, %v762_v19 }
 0x42d   :  { %v773_v38 = vmul.f32 %v2209_v35, %v761_v21 }
 0x42e   :  { %v782_v39 = vsel %vm778_vm6, 1.0, %v774_v36 }
 0x42f   :  { %v2211_v40 = vpop.eup %2210  ;;  %v786_v49 = vmul.f32 %v782_v39, %v742_v43  ;;  %v781_v41 = vsel %vm777_vm7, 1.0, %v773_v38  ;;  %v1058_v38 = vsub.s32 4, %v2417_v44 }
 0x430   :  { %v2213_v47 = vpop.eup %2212  ;;  %v785_v52 = vmul.f32 %v781_v41, %v741_v48  ;;  %v776_v53 = vmul.f32 %v2211_v40, %v764_v28 }
 0x431   :  { %v908_v51 = vadd.f32 %v886_v37, %v786_v49  ;;  %v775_v54 = vmul.f32 %v2213_v47, %v763_v29  ;;  %v1059_v39 = vrot.slane %v2423_v46, %v1058_v38 }
 0x432   :  { %v907_v50 = vadd.f32 %v886_v37, %v785_v52  ;;  %v784_v58 = vsel %vm780_vm8, 1.0, %v776_v53 }
 0x433   :  { %1022 = vrot.lane.b32.xlu1 %v908_v51, %s2263_s19  ;;  %v788_v45 = vmul.f32 %v784_v58, %v744_v59  ;;  %v783_v57 = vsel %vm779_vm9, 1.0, %v775_v54 }
 0x434   :  { %1020 = vrot.lane.b32.xlu0 %v907_v50, %s2263_s19  ;;  %v2130_v43 = vpack.c.bf16 %v908_v51, %v907_v50  ;;  %v787_v55 = vmul.f32 %v783_v57, %v743_v62 }
 0x435   :  { %v910_v63 = vadd.f32 %v902_v60, %v788_v45 }
 0x436   :  { %2131 = vmatprep.subr.bf16.mxu1 %v2130_v43  ;;  %v909_v48 = vadd.f32 %v902_v60, %v787_v55 }
 0x437   :  { %2133 = vmatpush3.bf16.msra.mxu1 %v2130_v43  ;;  %1026 = vrot.lane.b32.xlu1 %v910_v63, %s2263_s19 }
 0x438   :  { %1024 = vrot.lane.b32.xlu0 %v909_v48, %s2263_s19  ;;  %v2134_v61 = vpack.c.bf16 %v910_v63, %v909_v48  ;;  %v35_v48 = vld [vmem:[%s2682_s2 + $0x68] sm:$0xff] }
 0x43a   :  { %2135 = vmatprep.subr.bf16.mxu1 %v2134_v61 }
 0x43b   :  { %2137 = vmatpush3.bf16.msra.mxu1 %v2134_v61 }
 0x43c   :  { %2159 = vmatprep.subr.bf16.mxu1 %v2454_v6 }
 0x43e   :  { %2003 = vmatmul.mubr.msk.f32.vlgmr.msra.gmra.mrb[16].mxu1 %vm51_vm0, %v2333_v7  ;;  %v29_v7 = vld [vmem:[%s2682_s2 + $0x38] sm:$0xff] }
 0x43f   :  { %2005 = vmatprep.mubr.msk.f32.mxu1 %vm51_vm0, %v2338_v8  ;;  %2161 = vmatpush3.bf16.msra.mxu1 %v2454_v6  ;;  %v30_v8 = vld [vmem:[%s2682_s2 + $0x40] sm:$0xff] }
 0x442   :  { %2006 = vmatmul.mubr.msk.f32.gmra.mrb[18].mxu1 %vm51_vm0, %v2349_v9  ;;  %v31_v9 = vld [vmem:[%s2682_s2 + $0x48] sm:$0xff] }
 0x443   :  { %2008 = vmatprep.mubr.msk.f32.mxu1 %vm51_vm0, %v2354_v10  ;;  %v2138_v10 = vpack.c.bf16 %v30_v8, %v29_v7 }
 0x445   :  { %2139 = vmatprep.subr.bf16.mxu0 %v2138_v10 }
 0x446   :  { %2009 = vmatmul.mubr.msk.f32.gmra.mrb[20].mxu1 %vm51_vm0, %v2363_v11  ;;  %v32_v11 = vld [vmem:[%s2682_s2 + $0x50] sm:$0xff]  ;;  %2141 = vmatpush3.bf16.msra.mxu0 %v2138_v10 }
 0x447   :  { %2011 = vmatprep.mubr.msk.f32.mxu1 %vm51_vm0, %v2368_v12  ;;  %v2142_v12 = vpack.c.bf16 %v32_v11, %v31_v9 }
 0x449   :  { %2143 = vmatprep.subr.bf16.mxu0 %v2142_v12 }
 0x44a   :  { %2012 = vmatmul.mubr.msk.f32.gmra.mrb[22].mxu1 %vm51_vm0, %v2377_v13  ;;  %v33_v13 = vld [vmem:[%s2682_s2 + $0x58] sm:$0xff]  ;;  %2145 = vmatpush3.bf16.msra.mxu0 %v2142_v12  ;;  %s2268_s2 = smov [#allocation2]  }
 0x44b   :  { %v2146_v59 = vpack.c.bf16 %v34_v26, %v33_v13  ;;  %s1724_s5 = sshll.u32 %s2268_s2, 4  ;;  %s1725_s5 = int_to_ptr.vmem [resolvable:$true] %s1724_s5 }
 0x44c   :  { %s2238_s6 = scalar_lea.vmem %s1725_s5, 512  ;;  %p2243_p1 = scmp.lt.s32.totalorder %s1725_s5, %s1725_s5 }
 0x44d   :  { %2147 = vmatprep.subr.bf16.mxu0 %v2146_v59  ;;  %p2239_p0 = scmp.ne.s32.totalorder %s1725_s5, %s2238_s6  ;;  %p2244_p2 = scmp.lt.s32.totalorder %s2238_s6, %s2238_s6 }
 0x44e   :  { %2149 = vmatpush3.bf16.msra.mxu0 %v2146_v59 }
 0x44f   :  { %p2245_p3 = por %p2244_p2, %p2243_p1 }
 0x451   :  { %p2246_p4 = pnand %p2245_p3, %p2239_p0 }
 0x4a5   :  { %v1023_v5 = vpop.permute.xlu1 %1022 }
 0x4a6   :  { %v1021_v22 = vpop.permute.xlu0 %1020 }
 0x4a9   :  { %v1027_v23 = vpop.permute.xlu1 %1026 }
 0x4aa   :  { %v1025_v24 = vpop.permute.xlu0 %1024 }
 0x511   :  { %v2004_v62 = vpop.f32.mrb[16].mxu1 }
 0x512   :  { %v977_v56 = vpop.f32.mrb[17].mxu1  ;;  %v1049_v29 = vsel %vm218_vm2, %v2004_v62, %v1023_v5 }
 0x513   :  { %v1048_v27 = vsel %vm218_vm2, %v977_v56, %v1021_v22 }
 0x515   :  { %v2007_v3 = vpop.f32.mrb[18].mxu1 }
 0x516   :  { %v987_v14 = vpop.f32.mrb[19].mxu1  ;;  %v1051_v35 = vsel %vm218_vm2, %v2007_v3, %v1027_v23 }
 0x517   :  { %v1050_v33 = vsel %vm218_vm2, %v987_v14, %v1025_v24  ;;  %v1552_v14 = vsub.s32 5, %v2417_v44 }
 0x519   :  { %v2010_v18 = vpop.f32.mrb[20].mxu1 }
 0x51a   :  { %1038 = vrot.lane.b32.xlu1 %v2010_v18, %s2267_s28  ;;  %v997_v19 = vpop.f32.mrb[21].mxu1  ;;  %v1560_v18 = vsub.s32 6, %v2417_v44 }
 0x51b   :  { %1036 = vrot.lane.b32.xlu0 %v997_v19, %s2267_s28 }
 0x51c   :  { %v1561_v24 = vrot.slane %v2423_v46, %v1560_v18 }
 0x51d   :  { %v2013_v20 = vpop.f32.mrb[22].mxu1 }
 0x51e   :  { %1042 = vrot.lane.b32.xlu1 %v2013_v20, %s2267_s28  ;;  %v1007_v21 = vpop.f32.mrb[23].mxu1  ;;  %v2645_v20 = vrot.slane %v2423_v46, %v1552_v14 }
 0x51f   :  { %1040 = vrot.lane.b32.xlu0 %v1007_v21, %s2267_s28 }
 0x58c   :  { %v1039_v25 = vpop.permute.xlu1 %1038 }
 0x58d   :  { %v1037_v28 = vpop.permute.xlu0 %1036  ;;  %v1053_v31 = vsel %vm51_vm0, %v1049_v29, %v1039_v25 }
 0x58e   :  { %v1052_v30 = vsel %vm51_vm0, %v1048_v27, %v1037_v28 }
 0x58f   :  { %2026 = vmatprep.mubr.msk.f32.mxu0 %vm1060_vm10, %v1052_v30 }
 0x590   :  { %2027 = vmatmul.mubr.msk.f32.vlgmr.msra.gmra.mrb[14].mxu0 %vm1060_vm10, %v1053_v31  ;;  %v1043_v32 = vpop.permute.xlu1 %1042 }
 0x591   :  { %v1041_v34 = vpop.permute.xlu0 %1040  ;;  %v1055_v37 = vsel %vm51_vm0, %v1051_v35, %v1043_v32 }
 0x592   :  { %v1054_v36 = vsel %vm51_vm0, %v1050_v33, %v1041_v34 }
 0x593   :  { %2029 = vmatprep.mubr.msk.f32.mxu0 %vm1060_vm10, %v1054_v36 }
 0x594   :  { %2030 = vmatmul.mubr.msk.f32.gmra.mrb[16].mxu0 %vm1060_vm10, %v1055_v37 }
 0x595   :  { %2040 = vmatprep.mubr.msk.f32.mxu0 %vm51_vm0, %v2411_v42 }
 0x663   :  { %v2028_v40 = vpop.f32.mrb[14].mxu0 }
 0x664   :  { %v2582_v49 = vadd.f32 %v2028_v40, %v1059_v39  ;;  %v1139_v41 = vpop.f32.mrb[15].mxu0 }
 0x665   :  { %v2584_v47 = vadd.f32 %v1139_v41, %v1059_v39 }
 0x666   :  { %v1341_v52 = vmul.f32 %v2582_v49, %v2582_v49 }
 0x667   :  { %v1340_v53 = vmul.f32 %v2584_v47, %v2584_v47  ;;  %v2031_v51 = vpop.f32.mrb[16].mxu0  ;;  %v2150_v54 = vpack.c.bf16 %v2582_v49, %v2584_v47 }
 0x668   :  { %v2592_v50 = vadd.f32 %v2031_v51, %v1059_v39  ;;  %v1149_v58 = vpop.f32.mrb[17].mxu0 }
 0x669   :  { %v2162_v60 = vpack.c.bf16 %v1341_v52, %v1340_v53  ;;  %v2594_v45 = vadd.f32 %v1149_v58, %v1059_v39  ;;  %2151 = vmatprep.subr.bf16.mxu0 %v2150_v54  ;;  %v1709_v52 = vsub.s32 7, %v2417_v44 }
 0x66a   :  { %2153 = vmatpush3.bf16.msra.mxu0 %v2150_v54  ;;  %v1343_v43 = vmul.f32 %v2592_v50, %v2592_v50 }
 0x66b   :  { %2174 = vmatprep.subr.bf16.mxu1 %v2162_v60  ;;  %v2154_v57 = vpack.c.bf16 %v2592_v50, %v2594_v45  ;;  %v1342_v55 = vmul.f32 %v2594_v45, %v2594_v45 }
 0x66d   :  { %2155 = vmatprep.subr.bf16.mxu0 %v2154_v57  ;;  %v2166_v63 = vpack.c.bf16 %v1343_v43, %v1342_v55 }
 0x66e   :  { %2157 = vmatpush3.bf16.msra.mxu0 %v2154_v57  ;;  %v1710_v57 = vrot.slane %v2423_v46, %v1709_v52 }
 0x66f   :  { %2163 = vmatprep.subr.bf16.mxu0 %v2162_v60 }
 0x671   :  { %2041 = vmatmul.mubr.msk.f32.vlgmr.msra.gmra.mrb[18].mxu0 %vm51_vm0, %v2459_v15 }
 0x672   :  { %2165 = vmatpush3.bf16.msra.mxu0 %v2162_v60  ;;  %2043 = vmatprep.mubr.msk.f32.mxu0 %vm51_vm0, %v2464_v16 }
 0x673   :  { %2167 = vmatprep.subr.bf16.mxu0 %v2166_v63 }
 0x675   :  { %2044 = vmatmul.mubr.msk.f32.gmra.mrb[20].mxu0 %vm51_vm0, %v2474_v17 }
 0x676   :  { %2169 = vmatpush3.bf16.msra.mxu0 %v2166_v63  ;;  %2064 = vmatprep.mubr.msk.f32.mxu0 %vm51_vm0, %v2411_v42 }
 0x677   :  { %2080 = vmatprep.subr.mxu0 %v35_v48 }
 0x679   :  { %2065 = vmatmul.mubr.msk.f32.vlgmr.msra.gmra.mrb[22].mxu0 %vm51_vm0, %v2459_v15 }
 0x67a   :  { %2082 = vmatprep.mubr.msk.f32.mxu0 %vm213_vm1, %v2298_v0  ;;  %2081 = vmatpush3.msra.mxu0 %v35_v48 }
 0x67d   :  { %2083 = vmatmul.mubr.msk.f32.vlgmr.msra.gmra.mrb[24].mxu0 %vm213_vm1, %v2303_v1 }
 0x67e   :  { %2085 = vmatprep.mubr.msk.f32.mxu0 %vm213_vm1, %v2308_v2 }
 0x681   :  { %2086 = vmatmul.mubr.msk.f32.gmra.mrb[26].mxu0 %vm213_vm1, %v2315_v4 }
 0x744   :  { %v2042_v42 = vpop.f32.mrb[18].mxu0 }
 0x745   :  { %v1224_v15 = vpop.f32.mrb[19].mxu0 }
 0x746   :  { %2050 = vmatprep.mubr.msk.f32.mxu1 %vm218_vm2, %v1224_v15 }
 0x747   :  { %2051 = vmatmul.mubr.msk.f32.vlgmr.msra.gmra.mrb[24].mxu1 %vm218_vm2, %v2042_v42 }
 0x748   :  { %2176 = vmatpush3.bf16.msra.mxu1 %v2162_v60  ;;  %v2045_v0 = vpop.f32.mrb[20].mxu0 }
 0x749   :  { %2175 = vmatprep.subr.bf16.mxu1 %v2166_v63  ;;  %v1234_v61 = vpop.f32.mrb[21].mxu0 }
 0x74a   :  { %2053 = vmatprep.mubr.msk.f32.mxu1 %vm218_vm2, %v1234_v61 }
 0x74b   :  { %2054 = vmatmul.mubr.msk.f32.gmra.mrb[26].mxu1 %vm218_vm2, %v2045_v0 }
 0x74c   :  { %2177 = vmatpush3.bf16.msra.mxu1 %v2166_v63  ;;  %2067 = vmatprep.mubr.msk.f32.mxu1 %vm51_vm0, %v2464_v16  ;;  %v2066_v1 = vpop.f32.mrb[22].mxu0 }
 0x74d   :  { %2171 = vmatprep.subr.bf16.mxu1 %v2454_v6  ;;  %v1410_v2 = vpop.f32.mrb[23].mxu0 }
 0x74f   :  { %2068 = vmatmul.mubr.msk.f32.vlgmr.msra.gmra.mrb[28].mxu1 %vm51_vm0, %v2474_v17 }
 0x750   :  { %2173 = vmatpush3.bf16.msra.mxu1 %v2454_v6  ;;  %2074 = vmatprep.mubr.msk.f32.mxu1 %vm218_vm2, %v1410_v2  ;;  %v2084_v4 = vpop.f32.mrb[24].mxu0 }
 0x751   :  { %v1684_v7 = vpop.f32.mrb[25].mxu0 }
 0x753   :  { %2075 = vmatmul.mubr.msk.f32.vlgmr.msra.gmra.mrb[30].mxu1 %vm218_vm2, %v2066_v1 }
 0x754   :  { %v2087_v44 = vpop.f32.mrb[26].mxu0 }
 0x755   :  { %v1694_v0 = vpop.f32.mrb[27].mxu0 }
 0x81a   :  { %v2052_v8 = vpop.f32.mrb[24].mxu1 }
 0x81b   :  { %v1321_v9 = vpop.f32.mrb[25].mxu1  ;;  %v1527_v13 = vmul.f32 %v2052_v8, %v2052_v8  ;;  %v1543_v19 = vsub.f32 %v2582_v49, %v2052_v8 }
 0x81c   :  { %v1526_v6 = vmul.f32 %v1321_v9, %v1321_v9  ;;  %v1542_v5 = vsub.f32 %v2584_v47, %v1321_v9 }
 0x81e   :  { %v2635_v10 = vpop.f32.mrb[26].mxu1 }
 0x81f   :  { %v2637_v16 = vpop.f32.mrb[27].mxu1  ;;  %v1529_v61 = vmul.f32 %v2635_v10, %v2635_v10 }
 0x820   :  { %v1528_v1 = vmul.f32 %v2637_v16, %v2637_v16 }
 0x822   :  { %v2069_v11 = vpop.f32.mrb[28].mxu1 }
 0x823   :  { %v1420_v12 = vpop.f32.mrb[29].mxu1 }
 0x824   :  { %2077 = vmatprep.mubr.msk.f32.mxu1 %vm218_vm2, %v1420_v12 }
 0x825   :  { %2078 = vmatmul.mubr.msk.f32.gmra.mrb[32].mxu1 %vm218_vm2, %v2069_v11  ;;  %v1545_v11 = vsub.f32 %v2592_v50, %v2635_v10 }
 0x826   :  { %v2076_v17 = vpop.f32.mrb[30].mxu1 }
 0x827   :  { %v1531_v26 = vsub.f32 %v2076_v17, %v1527_v13  ;;  %v1507_v59 = vpop.f32.mrb[31].mxu1  ;;  %v1544_v13 = vsub.f32 %v2594_v45, %v2637_v16 }
 0x828   :  { %v1530_v62 = vsub.f32 %v1507_v59, %v1526_v6 }
 0x829   :  { %v1535_v56 = vadd.f32 1e-05, %v1531_v26 }
 0x82a   :  { %v1534_v3 = vadd.f32 1e-05, %v1530_v62 }
 0x82b   :  { %2214 = vrsqrt.f32 %v1535_v56 }
 0x82c   :  { %2216 = vrsqrt.f32 %v1534_v3 }
 0x835   :  { %v2215_v21 = vpop.eup %2214 }
 0x836   :  { %v2217_v22 = vpop.eup %2216  ;;  %v1547_v23 = vmul.f32 %v2215_v21, %v1543_v19 }
 0x837   :  { %v1546_v25 = vmul.f32 %v2217_v22, %v1542_v5 }
 0x838   :  { %v1555_v27 = vmul.f32 %v2645_v20, %v1547_v23 }
 0x839   :  { %v1554_v28 = vmul.f32 %v2645_v20, %v1546_v25 }
 0x83a   :  { %v1563_v29 = vadd.f32 %v1561_v24, %v1555_v27 }
 0x83b   :  { %v1562_v30 = vadd.f32 %v1561_v24, %v1554_v28 }
 0x83c   :  { %v1567_v31 = vmin.f32 %v1563_v29, 20.0  ;;  %vm1599_vm11 = vcmp.gt.f32.partialorder %v1563_v29, 20.0 }
 0x83d   :  { %v1566_v32 = vmin.f32 %v1562_v30, 20.0  ;;  %vm1598_vm12 = vcmp.gt.f32.partialorder %v1562_v30, 20.0 }
 0x83e   :  { %v1572_v33 = vmul.f32 1.442695, %v1567_v31 }
 0x83f   :  { %v1570_v34 = vmul.f32 1.442695, %v1566_v32 }
 0x840   :  { %2218 = vpow2.f32 %v1572_v33 }
 0x841   :  { %2220 = vpow2.f32 %v1570_v34 }
 0x84a   :  { %v2219_v35 = vpop.eup %2218 }
 0x84b   :  { %v2221_v36 = vpop.eup %2220  ;;  %v1579_v37 = vadd.f32 2.0, %v2219_v35 }
 0x84c   :  { %v1578_v38 = vadd.f32 2.0, %v2221_v36 }
 0x84d   :  { %v1583_v39 = vmul.f32 %v2219_v35, %v1579_v37 }
 0x84e   :  { %v1582_v40 = vmul.f32 %v2221_v36, %v1578_v38 }
 0x84f   :  { %v1587_v49 = vadd.f32 2.0, %v1583_v39 }
 0x850   :  { %v1586_v41 = vadd.f32 2.0, %v1582_v40 }
 0x851   :  { %2222 = vrcp.f32 %v1587_v49 }
 0x852   :  { %2224 = vrcp.f32 %v1586_v41 }
 0x85b   :  { %v2223_v47 = vpop.eup %2222 }
 0x85c   :  { %v2225_v53 = vpop.eup %2224  ;;  %v1595_v51 = vmul.f32 %v2223_v47, %v1583_v39 }
 0x85d   :  { %v1594_v54 = vmul.f32 %v2225_v53, %v1582_v40 }
 0x85e   :  { %v1603_v58 = vsel %vm1599_vm11, 1.0, %v1595_v51 }
 0x85f   :  { %v1607_v60 = vmul.f32 %v1603_v58, %v1563_v29  ;;  %v1602_v43 = vsel %vm1598_vm12, 1.0, %v1594_v54 }
 0x860   :  { %v1606_v55 = vmul.f32 %v1602_v43, %v1562_v30 }
 0x861   :  { %v1704_v63 = vadd.f32 %v2084_v4, %v1607_v60 }
 0x862   :  { %v1703_v48 = vadd.f32 %v1684_v7, %v1606_v55 }
 0x863   :  { %v1712_v42 = vadd.f32 %v1710_v57, %v1704_v63 }
 0x864   :  { %v1711_v15 = vadd.f32 %v1710_v57, %v1703_v48 }
 0x865   :  { %1716 = vst.msk [vmem:[#allocation2 + $0x8] sm:$0xff] %vm218_vm2, %v1712_v42 }
 0x866   :  { %1715 = vst.msk [vmem:[#allocation2] sm:$0xff] %vm218_vm2, %v1711_v15 }
 0x8f8   :  { %v2079_v2 = vpop.f32.mrb[32].mxu1 }
 0x8f9   :  { %v1533_v46 = vsub.f32 %v2079_v2, %v1529_v61  ;;  %v1517_v8 = vpop.f32.mrb[33].mxu1 }
 0x8fa   :  { %v1532_v9 = vsub.f32 %v1517_v8, %v1528_v1 }
 0x8fb   :  { %v1537_v4 = vadd.f32 1e-05, %v1533_v46 }
 0x8fc   :  { %v1536_v7 = vadd.f32 1e-05, %v1532_v9 }
 0x8fd   :  { %2226 = vrsqrt.f32 %v1537_v4 }
 0x8fe   :  { %2228 = vrsqrt.f32 %v1536_v7 }
 0x907   :  { %v2227_v12 = vpop.eup %2226 }
 0x908   :  { %v2229_v6 = vpop.eup %2228  ;;  %v1549_v17 = vmul.f32 %v2227_v12, %v1545_v11 }
 0x909   :  { %v1548_v26 = vmul.f32 %v2229_v6, %v1544_v13 }
 0x90a   :  { %v1557_v59 = vmul.f32 %v2645_v20, %v1549_v17 }
 0x90b   :  { %v1556_v62 = vmul.f32 %v2645_v20, %v1548_v26 }
 0x90c   :  { %v1565_v56 = vadd.f32 %v1561_v24, %v1557_v59 }
 0x90d   :  { %v1564_v3 = vadd.f32 %v1561_v24, %v1556_v62 }
 0x90e   :  { %v1569_v14 = vmin.f32 %v1565_v56, 20.0  ;;  %vm1601_vm13 = vcmp.gt.f32.partialorder %v1565_v56, 20.0 }
 0x90f   :  { %v1568_v18 = vmin.f32 %v1564_v3, 20.0  ;;  %vm1600_vm14 = vcmp.gt.f32.partialorder %v1564_v3, 20.0 }
 0x910   :  { %v1576_v19 = vmul.f32 1.442695, %v1569_v14 }
 0x911   :  { %v1574_v21 = vmul.f32 1.442695, %v1568_v18 }
 0x912   :  { %2230 = vpow2.f32 %v1576_v19 }
 0x913   :  { %2232 = vpow2.f32 %v1574_v21 }
 0x91c   :  { %v2231_v50 = vpop.eup %2230 }
 0x91d   :  { %v2233_v10 = vpop.eup %2232  ;;  %v1581_v5 = vadd.f32 2.0, %v2231_v50 }
 0x91e   :  { %v1580_v22 = vadd.f32 2.0, %v2233_v10 }
 0x91f   :  { %v1585_v45 = vmul.f32 %v2231_v50, %v1581_v5 }
 0x920   :  { %v1584_v16 = vmul.f32 %v2233_v10, %v1580_v22 }
 0x921   :  { %v1589_v23 = vadd.f32 2.0, %v1585_v45 }
 0x922   :  { %v1588_v25 = vadd.f32 2.0, %v1584_v16 }
 0x923   :  { %2234 = vrcp.f32 %v1589_v23 }
 0x924   :  { %2236 = vrcp.f32 %v1588_v25 }
 0x92d   :  { %v2235_v27 = vpop.eup %2234 }
 0x92e   :  { %v2237_v20 = vpop.eup %2236  ;;  %v1597_v28 = vmul.f32 %v2235_v27, %v1585_v45 }
 0x92f   :  { %v1596_v24 = vmul.f32 %v2237_v20, %v1584_v16 }
 0x930   :  { %v1605_v29 = vsel %vm1601_vm13, 1.0, %v1597_v28 }
 0x931   :  { %v1609_v30 = vmul.f32 %v1605_v29, %v1565_v56  ;;  %v1604_v31 = vsel %vm1600_vm14, 1.0, %v1596_v24 }
 0x932   :  { %v1608_v32 = vmul.f32 %v1604_v31, %v1564_v3 }
 0x933   :  { %v1706_v33 = vadd.f32 %v2087_v44, %v1609_v30 }
 0x934   :  { %v1705_v34 = vadd.f32 %v1694_v0, %v1608_v32 }
 0x935   :  { %v1714_v35 = vadd.f32 %v1710_v57, %v1706_v33 }
 0x936   :  { %v1713_v36 = vadd.f32 %v1710_v57, %v1705_v34 }
 0x937   :  { %1718 = vst.msk [vmem:[#allocation2 + $0x18] sm:$0xff] %vm218_vm2, %v1714_v35 }
 0x938   :  { %1717 = vst.msk [vmem:[#allocation2 + $0x10] sm:$0xff] %vm218_vm2, %v1713_v36 }
 0x939   :  { %2249 = shalt.err (!%p2246_p4)
}
 0x93a   :  { %s2250_s9 = scalar_lea.hbm %s2684_s4, 512 }
 0x93b   :  { %p2251_p5 = scmp.ne.s32.totalorder %s2684_s4, %s2250_s9  ;;  %p2254_p6 = scmp.lt.u32.totalorder %s2250_s9, %s2684_s4 }
 0x93d   :  { %p2256_p7 = pnand %p2254_p6, %p2251_p5 }
 0x93f   :  { %2259 = shalt.err (!%p2256_p7)
}
 0x940   :  { %s2269_s13 = smov 128  }
 0x941   :  { %1730 = dma.vmem_to_hbm [thread:$0]  %s1725_s5, 512, %s2684_s4, [#allocation3], %s2269_s13, %s2269_s13, %s2262_s25  }
 0x942   :  { %2260 = dma.done.wait [#allocation3], 512  }
 0x943   :  { %2261 = vsyncadd [#allocation3], 4294966784 }
 0x944   :  { %1734 = vsyncpa [#allocation3], 1 }

</bundles_post_ra>
